<compile_context>
chip_gen: v6e
topology: v6e:2x2x1
jax: 0.10.0
libtpu: 0.0.40
codegen_flags: <defaults>
</compile_context>

<pallas_src>
import functools

import jax
import jax.numpy as jnp
import numpy as np
from jax.experimental import pallas as pl
from jax.experimental.pallas import tpu as pltpu


# ---- static layout constants for the packed weight / bias / output slabs ----
_W_BIG_LANES = 256   # lanes   0..255 : block-diag fused [hid|emb] -> [4H | 3H] weight
_W_AUX_OFF   = 256   # lanes 256..383 : wk (K rows, H lanes) then w_ih_ctx (K rows, 3H lanes)
_W_OUT_OFF   = 384   # lanes 384..    : wo (H rows, O lanes)
_OUT_SEG     = 32    # output slab: [logp | h_new | attn], each padded to 32 lanes
_OUT_LANES   = 128   # total output lanes (one full vreg width)


# ----------------------------------------------------------------------------
# Pallas kernel: one full decoder step for the whole (small) batch.
# ----------------------------------------------------------------------------
def _decoder_step_kernel(xh_ref, ann_ref, w_ref, bv_ref, out_ref, *, H, O):
    f32 = jnp.float32
    B = xh_ref.shape[0]
    NK = ann_ref.shape[1]

    xh = xh_ref[...].astype(f32)          # [B, R]   cols = [hid(H) | emb(E) | 0-pad]
    hid = xh[:, :H]                       # [B, H]
    ann = ann_ref[...].astype(f32)        # [B, NK, K]

    b_hid = bv_ref[0:1, :4 * H]           # [1, 4H] = [bq | bhr | bhz | bhn]
    b_ih = bv_ref[1:2, :3 * H]            # [1, 3H] = [bir | biz | bin]
    bk = bv_ref[2:3, :H]                  # [1, H]
    bo = bv_ref[3:4, :O]                  # [1, O]
    vw = bv_ref[4:5, :H]                  # [1, H]

    # ---- ONE fused MXU op: [hid | emb] @ block-diag([w_hid(4H) ; w_ih_emb(3H)]) ----
    big = jnp.dot(xh, w_ref[:, :_W_BIG_LANES], preferred_element_type=f32)   # [B, 256]
    hid_all = big[:, :4 * H] + b_hid      # [B, 4H]
    q_proj = hid_all[:, :H]               # Wq h + bq
    g_hr = hid_all[:, H:2 * H]            # Whr h + bhr
    g_hz = hid_all[:, 2 * H:3 * H]        # Whz h + bhz
    g_hn = hid_all[:, 3 * H:4 * H]        # Whn h + bhn
    g_x_emb = big[:, 4 * H:4 * H + 3 * H]  # emb-half of the GRU input gates [B, 3H]

    # ---- additive (Bahdanau) attention ----
    # NOTE: the score bias of v (Linear(H,1)) is softmax-invariant and omitted.
    # TODO(synk): in an autoregressive decode loop, k_proj is step-invariant ->
    # hoist it out of the per-step kernel (compute once per sequence).
    wk = w_ref[:ann_ref.shape[2], _W_AUX_OFF:_W_AUX_OFF + H]                 # [K, H]
    k_proj = jnp.einsum("bnk,kh->bnh", ann, wk,
                        preferred_element_type=f32) + bk                     # [B, NK, H]
    energy = jnp.tanh(q_proj[:, None, :] + k_proj)                           # [B, NK, H]
    scores = jnp.sum(energy * vw, axis=-1)                                   # [B, NK]

    s_max = jnp.max(scores, axis=-1, keepdims=True)
    s_exp = jnp.exp(scores - s_max)
    attn = s_exp / jnp.sum(s_exp, axis=-1, keepdims=True)                    # exact softmax

    # Context on the VPU (broadcast-mul + sublane reduce) instead of per-batch MXU passes.
    context = jnp.sum(attn[:, :, None] * ann, axis=1)                        # [B, K]

    # ---- GRU cell (nn.GRU semantics, 1 step), input = cat([emb, context]) ----
    w_ih_ctx = w_ref[:ann_ref.shape[2], _W_AUX_OFF + H:_W_AUX_OFF + 4 * H]   # [K, 3H]
    g_x = g_x_emb + jnp.dot(context, w_ih_ctx, preferred_element_type=f32) + b_ih
    r = jax.nn.sigmoid(g_x[:, :H] + g_hr)
    z = jax.nn.sigmoid(g_x[:, H:2 * H] + g_hz)
    n = jnp.tanh(g_x[:, 2 * H:3 * H] + r * g_hn)
    h_new = (1.0 - z) * n + z * hid                                          # [B, H]

    # ---- output Linear + LogSoftmax ----
    wo = w_ref[:H, _W_OUT_OFF:_W_OUT_OFF + O]                                # [H, O]
    logits = jnp.dot(h_new, wo, preferred_element_type=f32) + bo             # [B, O]
    l_max = jnp.max(logits, axis=-1, keepdims=True)
    shifted = logits - l_max
    logp = shifted - jnp.log(jnp.sum(jnp.exp(shifted), axis=-1, keepdims=True))

    # ---- single lane-dense [B, 128] output slab: one unmasked store, one DMA ----
    pieces = []
    for arr in (logp, h_new, attn):
        pieces.append(arr)
        pad = _OUT_SEG - arr.shape[1]
        if pad:
            pieces.append(jnp.zeros((B, pad), f32))
    tail = _OUT_LANES - 3 * _OUT_SEG
    if tail:
        pieces.append(jnp.zeros((B, tail), f32))
    out_ref[...] = jnp.concatenate(pieces, axis=-1)


# ----------------------------------------------------------------------------
# Wrapper
# ----------------------------------------------------------------------------
def attention_decoder_step(input_ids, hidden, annotations, packed):
    """input_ids: [1, B, 1] int32, hidden: [1, B, H], annotations: [B, NK, K]."""
    B = input_ids.shape[1]
    H = hidden.shape[-1]
    NK = annotations.shape[1]
    O = packed["emb_table"].shape[0]

    # Layout guards (prevent silent perf/correctness cliffs if dims grow).
    assert 4 * H <= 128 and 3 * H <= 128, "gate slices must stay within one 128-lane vreg"
    assert O <= _OUT_SEG and H <= _OUT_SEG and NK <= _OUT_SEG, "output slab segments are 32 lanes"

    # Embedding lookup (gather) stays as JAX glue.
    # TODO(synk): nn.Dropout(p=0.1) (on the embedding and inside the attention) is
    # not applied -> eval-mode semantics only.
    # TODO(synk): for autoregressive decode, wrap a grid=(T,) around this kernel
    # (constant weight index_maps so weights stay VMEM-resident, scalar-prefetched
    # token ids with a pl.Element row-gather for the embedding, and
    # input_output_aliases for the hidden-state carry) to amortize launch + DMA.
    emb = jnp.take(packed["emb_table"], input_ids[0, :, 0], axis=0)   # [B, E]
    hid = hidden[0]                                                   # [B, H]
    xh = jnp.concatenate([hid, emb], axis=1)                          # [B, H+E]
    rows = packed["w_slab"].shape[0]
    if xh.shape[1] < rows:                                            # pad to slab rows
        xh = jnp.pad(xh, ((0, 0), (0, rows - xh.shape[1])))

    kernel = functools.partial(_decoder_step_kernel, H=H, O=O)
    vmem = pl.BlockSpec(memory_space=pltpu.MemorySpace.VMEM)

    out_slab = pl.pallas_call(
        kernel,
        out_shape=jax.ShapeDtypeStruct((B, _OUT_LANES), jnp.float32),
        in_specs=[vmem, vmem, vmem, vmem],
        out_specs=vmem,
    )(xh, annotations, packed["w_slab"], packed["bv_slab"])

    logp = out_slab[:, :O]
    h_new = out_slab[:, _OUT_SEG:_OUT_SEG + H]
    attn = out_slab[:, 2 * _OUT_SEG:2 * _OUT_SEG + NK]

    # PyTorch conventions: o [1, B, O], h [1, B, H], a [B, NK]
    return logp[None], h_new[None], attn


# ----------------------------------------------------------------------------
# Parameter construction (logical, per-layer) and packing for the kernel.
# ----------------------------------------------------------------------------
def make_params(key, *, out_dim, emb_dim, hid_dim, key_dim):
    ks = jax.random.split(key, 32)
    it = iter(ks)

    def w(shape, scale=0.1):
        return (scale * jax.random.normal(next(it), shape)).astype(jnp.float32)

    H, E, K, O = hid_dim, emb_dim, key_dim, out_dim
    return {
        "emb_table": w((O, E)),
        # AdditiveAttention: Wq: H->H, Wk: K->H, v: H->1 (bias of v is softmax-dead)
        "wq": w((H, H)), "bq": w((H,)),
        "wk": w((K, H)), "bk": w((H,)),
        "vw": w((H,)),
        # GRU(E+K -> H), matmul-ready [in, H] per gate
        "wir": w((E + K, H)), "wiz": w((E + K, H)), "win": w((E + K, H)),
        "bir": w((H,)), "biz": w((H,)), "bin": w((H,)),
        "whr": w((H, H)), "whz": w((H, H)), "whn": w((H, H)),
        "bhr": w((H,)), "bhz": w((H,)), "bhn": w((H,)),
        # out: Linear(H -> O)
        "wo": w((H, O)), "bo": w((O,)),
    }


def pack_params(p, *, hid_dim, emb_dim, out_dim, key_dim, weight_dtype=jnp.float32):
    """Pack every weight into one [rows, 512] slab and every bias/vector into one
    [8, 128] slab -> 2 parameter DMAs per kernel call instead of 10+.
    NOTE: on v6e/v7x, weight_dtype=jnp.bfloat16 halves weight/annotation DMA bytes
    (matmuls keep preferred_element_type=f32); kept f32 here for exact parity with
    the f32 reference — total weight bytes are < 100 KiB either way."""
    H, E, K, O = hid_dim, emb_dim, key_dim, out_dim
    assert 4 * H <= 128, "fused hidden-gate biases must fit one 128-lane slab row"
    assert 4 * H + 3 * H <= _W_BIG_LANES, "block-diag fused weight exceeds its lane budget"
    assert _W_AUX_OFF + 4 * H <= _W_OUT_OFF, "wk + w_ih_ctx exceed the aux lane region"
    assert O <= 128, "output weight exceeds its lane region"

    w_hid = jnp.concatenate([p["wq"], p["whr"], p["whz"], p["whn"]], axis=1)   # [H, 4H]
    w_ih = jnp.concatenate([p["wir"], p["wiz"], p["win"]], axis=1)             # [E+K, 3H]

    rows = max(H + E, K, H)
    rows = ((rows + 7) // 8) * 8
    lanes = _W_OUT_OFF + ((O + 127) // 128) * 128
    w_slab = jnp.zeros((rows, lanes), jnp.float32)
    # block-diagonal fused weight:  [hid | emb] @ W  ->  [hid_all(4H) | g_x_emb(3H)]
    w_slab = w_slab.at[:H, :4 * H].set(w_hid)
    w_slab = w_slab.at[H:H + E, 4 * H:4 * H + 3 * H].set(w_ih[:E])
    # attention key projection, context-half of the GRU input weight, output weight
    w_slab = w_slab.at[:K, _W_AUX_OFF:_W_AUX_OFF + H].set(p["wk"])
    w_slab = w_slab.at[:K, _W_AUX_OFF + H:_W_AUX_OFF + 4 * H].set(w_ih[E:])
    w_slab = w_slab.at[:H, _W_OUT_OFF:_W_OUT_OFF + O].set(p["wo"])

    # single [8, 128] bias/vector slab: one DMA for every 1-D parameter
    bv = jnp.zeros((8, 128), jnp.float32)
    bv = bv.at[0, :4 * H].set(jnp.concatenate([p["bq"], p["bhr"], p["bhz"], p["bhn"]]))
    bv = bv.at[1, :3 * H].set(jnp.concatenate([p["bir"], p["biz"], p["bin"]]))
    bv = bv.at[2, :H].set(p["bk"])
    bv = bv.at[3, :O].set(p["bo"])
    bv = bv.at[4, :H].set(p["vw"])

    return {
        "emb_table": p["emb_table"],
        "w_slab": w_slab.astype(weight_dtype),
        "bv_slab": bv,
    }


# ----------------------------------------------------------------------------
# Pure-JAX reference (unfused math) for a sanity check.
# ----------------------------------------------------------------------------
def _reference_step(input_ids, hidden, annotations, p):
    emb = jnp.take(p["emb_table"], input_ids[0, :, 0], axis=0)
    hid = hidden[0]
    q_proj = hid @ p["wq"] + p["bq"]
    k_proj = jnp.einsum("bnk,kh->bnh", annotations, p["wk"]) + p["bk"]
    energy = jnp.tanh(q_proj[:, None, :] + k_proj)
    scores = jnp.einsum("bnh,h->bn", energy, p["vw"])
    attn = jax.nn.softmax(scores, axis=-1)
    context = jnp.einsum("bn,bnk->bk", attn, annotations)
    x = jnp.concatenate([emb, context], axis=1)
    r = jax.nn.sigmoid(x @ p["wir"] + p["bir"] + hid @ p["whr"] + p["bhr"])
    z = jax.nn.sigmoid(x @ p["wiz"] + p["biz"] + hid @ p["whz"] + p["bhz"])
    n = jnp.tanh(x @ p["win"] + p["bin"] + r * (hid @ p["whn"] + p["bhn"]))
    h_new = (1.0 - z) * n + z * hid
    logits = h_new @ p["wo"] + p["bo"]
    logp = jax.nn.log_softmax(logits, axis=-1)
    return logp[None], h_new[None], attn


if __name__ == "__main__":
    B, H, E, O, K, NK = 2, 32, 16, 20, 16, 8   # GRU input dim = E + K

    root = jax.random.PRNGKey(0)
    k_par, k_in, k_ann, k_hid = jax.random.split(root, 4)

    params = make_params(k_par, out_dim=O, emb_dim=E, hid_dim=H, key_dim=K)
    packed = pack_params(params, hid_dim=H, emb_dim=E, out_dim=O, key_dim=K)

    input_ids = jax.random.randint(k_in, (1, B, 1), 0, O, dtype=jnp.int32)    # [1, B, 1]
    hidden = (0.1 * jax.random.normal(k_hid, (1, B, H))).astype(jnp.float32)  # [1, B, H]
    annotations = (0.5 * jax.random.normal(k_ann, (B, NK, K))).astype(jnp.float32)

    o, h, a = attention_decoder_step(input_ids, hidden, annotations, packed)
    jax.block_until_ready((o, h, a))

    o_ref, h_ref, a_ref = _reference_step(input_ids, hidden, annotations, params)
    np.testing.assert_allclose(np.asarray(o), np.asarray(o_ref), atol=2e-4, rtol=2e-4)
    np.testing.assert_allclose(np.asarray(h), np.asarray(h_ref), atol=2e-4, rtol=2e-4)
    np.testing.assert_allclose(np.asarray(a), np.asarray(a_ref), atol=2e-4, rtol=2e-4)

    assert o.shape == (1, B, O) and h.shape == (1, B, H) and a.shape == (B, NK)
    print("KERNEL_OK")
</pallas_src>

<mosaic_0001>
module attributes {stable_mosaic.version = 11 : i64} {
  func.func @_decoder_step_kernel(%arg0: memref<2x48xf32, #tpu.memory_space<vmem>>, %arg1: memref<2x8x16xf32, #tpu.memory_space<vmem>>, %arg2: memref<48x512xf32, #tpu.memory_space<vmem>>, %arg3: memref<8x128xf32, #tpu.memory_space<vmem>>, %arg4: memref<2x128xf32, #tpu.memory_space<vmem>>) attributes {dimension_semantics = [], scalar_prefetch = 0 : i64, scratch_operands = 0 : i64, tpu.core_type = #tpu.core_type<tc>} {
    %c0 = arith.constant 0 : index
    %c0_0 = arith.constant 0 : index
    %0 = vector.load %arg0[%c0, %c0_0] : memref<2x48xf32, #tpu.memory_space<vmem>>, vector<2x48xf32>
    %1 = vector.extract_strided_slice %0 {offsets = [0, 0], sizes = [2, 32], strides = [1, 1]} : vector<2x48xf32> to vector<2x32xf32>
    %c0_1 = arith.constant 0 : index
    %c0_2 = arith.constant 0 : index
    %c0_3 = arith.constant 0 : index
    %2 = vector.load %arg1[%c0_1, %c0_2, %c0_3] : memref<2x8x16xf32, #tpu.memory_space<vmem>>, vector<2x8x16xf32>
    %c0_4 = arith.constant 0 : index
    %c0_5 = arith.constant 0 : index
    %3 = vector.load %arg3[%c0_4, %c0_5] : memref<8x128xf32, #tpu.memory_space<vmem>>, vector<1x128xf32>
    %c1 = arith.constant 1 : index
    %c0_6 = arith.constant 0 : index
    %4 = vector.load %arg3[%c1, %c0_6] : memref<8x128xf32, #tpu.memory_space<vmem>>, vector<1x96xf32>
    %c2 = arith.constant 2 : index
    %c0_7 = arith.constant 0 : index
    %5 = vector.load %arg3[%c2, %c0_7] : memref<8x128xf32, #tpu.memory_space<vmem>>, vector<1x32xf32>
    %c3 = arith.constant 3 : index
    %c0_8 = arith.constant 0 : index
    %6 = vector.load %arg3[%c3, %c0_8] : memref<8x128xf32, #tpu.memory_space<vmem>>, vector<1x20xf32>
    %c4 = arith.constant 4 : index
    %c0_9 = arith.constant 0 : index
    %7 = vector.load %arg3[%c4, %c0_9] : memref<8x128xf32, #tpu.memory_space<vmem>>, vector<1x32xf32>
    %c0_10 = arith.constant 0 : index
    %c0_11 = arith.constant 0 : index
    %8 = vector.load %arg2[%c0_10, %c0_11] : memref<48x512xf32, #tpu.memory_space<vmem>>, vector<48x256xf32>
    %cst = arith.constant dense<0.000000e+00> : vector<2x256xf32>
    %9 = tpu.matmul %0, %8, %cst {dimension_numbers = #tpu.dot_dimension_numbers<[1], [0], [0], [1], [0, 0, 1, 1], [], []>} : vector<2x48xf32>, vector<48x256xf32>, vector<2x256xf32> -> vector<2x256xf32>
    %10 = vector.extract_strided_slice %9 {offsets = [0, 0], sizes = [2, 128], strides = [1, 1]} : vector<2x256xf32> to vector<2x128xf32>
    %11 = vector.broadcast %3 : vector<1x128xf32> to vector<2x128xf32>
    %12 = arith.addf %10, %11 : vector<2x128xf32>
    %13 = vector.extract_strided_slice %12 {offsets = [0, 0], sizes = [2, 32], strides = [1, 1]} : vector<2x128xf32> to vector<2x32xf32>
    %14 = vector.extract_strided_slice %12 {offsets = [0, 32], sizes = [2, 32], strides = [1, 1]} : vector<2x128xf32> to vector<2x32xf32>
    %15 = vector.extract_strided_slice %12 {offsets = [0, 64], sizes = [2, 32], strides = [1, 1]} : vector<2x128xf32> to vector<2x32xf32>
    %16 = vector.extract_strided_slice %12 {offsets = [0, 96], sizes = [2, 32], strides = [1, 1]} : vector<2x128xf32> to vector<2x32xf32>
    %17 = vector.extract_strided_slice %9 {offsets = [0, 128], sizes = [2, 96], strides = [1, 1]} : vector<2x256xf32> to vector<2x96xf32>
    %c0_12 = arith.constant 0 : index
    %c256 = arith.constant 256 : index
    %18 = vector.load %arg2[%c0_12, %c256] : memref<48x512xf32, #tpu.memory_space<vmem>>, vector<16x32xf32>
    "tpu.trace_start"() <{level = 10 : i32, message = "bnk,kh->bnh"}> : () -> ()
    %cst_13 = arith.constant dense<0.000000e+00> : vector<2x8x32xf32>
    %19 = tpu.matmul %2, %18, %cst_13 {dimension_numbers = #tpu.dot_dimension_numbers<[2], [0], [0, 1], [1], [0, 0, 0, 1, 1, 1], [], []>} : vector<2x8x16xf32>, vector<16x32xf32>, vector<2x8x32xf32> -> vector<2x8x32xf32>
    "tpu.trace_stop"() : () -> ()
    %20 = vector.shape_cast %5 : vector<1x32xf32> to vector<1x1x32xf32>
    %21 = vector.broadcast %20 : vector<1x1x32xf32> to vector<2x8x32xf32>
    %22 = arith.addf %19, %21 : vector<2x8x32xf32>
    %23 = vector.shape_cast %13 : vector<2x32xf32> to vector<2x1x32xf32>
    %24 = vector.broadcast %23 : vector<2x1x32xf32> to vector<2x8x32xf32>
    %25 = arith.addf %24, %22 : vector<2x8x32xf32>
    %26 = math.tanh %25 : vector<2x8x32xf32>
    %27 = vector.shape_cast %7 : vector<1x32xf32> to vector<1x1x32xf32>
    %28 = vector.broadcast %27 : vector<1x1x32xf32> to vector<2x8x32xf32>
    %29 = arith.mulf %26, %28 : vector<2x8x32xf32>
    %cst_14 = arith.constant dense<0.000000e+00> : vector<2x8xf32>
    %30 = vector.multi_reduction <add>, %29, %cst_14 [2] : vector<2x8x32xf32> to vector<2x8xf32>
    %cst_15 = arith.constant dense<0xFF800000> : vector<2xf32>
    %31 = vector.multi_reduction <maximumf>, %30, %cst_15 [1] : vector<2x8xf32> to vector<2xf32>
    %32 = vector.shape_cast %31 : vector<2xf32> to vector<2x1xf32>
    %33 = vector.broadcast %32 : vector<2x1xf32> to vector<2x8xf32>
    %34 = arith.subf %30, %33 : vector<2x8xf32>
    %35 = math.exp %34 : vector<2x8xf32>
    %cst_16 = arith.constant dense<0.000000e+00> : vector<2xf32>
    %36 = vector.multi_reduction <add>, %35, %cst_16 [1] : vector<2x8xf32> to vector<2xf32>
    %37 = vector.shape_cast %36 : vector<2xf32> to vector<2x1xf32>
    %38 = vector.broadcast %37 : vector<2x1xf32> to vector<2x8xf32>
    %39 = arith.divf %35, %38 : vector<2x8xf32>
    %40 = vector.shape_cast %39 : vector<2x8xf32> to vector<2x8x1xf32>
    %41 = vector.broadcast %40 : vector<2x8x1xf32> to vector<2x8x16xf32>
    %42 = arith.mulf %41, %2 : vector<2x8x16xf32>
    %cst_17 = arith.constant dense<0.000000e+00> : vector<2x16xf32>
    %43 = vector.multi_reduction <add>, %42, %cst_17 [1] : vector<2x8x16xf32> to vector<2x16xf32>
    %c0_18 = arith.constant 0 : index
    %c288 = arith.constant 288 : index
    %44 = vector.load %arg2[%c0_18, %c288] : memref<48x512xf32, #tpu.memory_space<vmem>>, vector<16x96xf32>
    %cst_19 = arith.constant dense<0.000000e+00> : vector<2x96xf32>
    %45 = tpu.matmul %43, %44, %cst_19 {dimension_numbers = #tpu.dot_dimension_numbers<[1], [0], [0], [1], [0, 0, 1, 1], [], []>} : vector<2x16xf32>, vector<16x96xf32>, vector<2x96xf32> -> vector<2x96xf32>
    %46 = arith.addf %17, %45 : vector<2x96xf32>
    %47 = vector.broadcast %4 : vector<1x96xf32> to vector<2x96xf32>
    %48 = arith.addf %46, %47 : vector<2x96xf32>
    %49 = vector.extract_strided_slice %48 {offsets = [0, 0], sizes = [2, 32], strides = [1, 1]} : vector<2x96xf32> to vector<2x32xf32>
    %50 = arith.addf %49, %14 : vector<2x32xf32>
    %51 = arith.negf %50 : vector<2x32xf32>
    %52 = math.exp %51 : vector<2x32xf32>
    %cst_20 = arith.constant 1.000000e+00 : f32
    %53 = vector.broadcast %cst_20 : f32 to vector<2x32xf32>
    %54 = arith.addf %53, %52 : vector<2x32xf32>
    %55 = arith.divf %53, %54 : vector<2x32xf32>
    %56 = vector.extract_strided_slice %48 {offsets = [0, 32], sizes = [2, 32], strides = [1, 1]} : vector<2x96xf32> to vector<2x32xf32>
    %57 = arith.addf %56, %15 : vector<2x32xf32>
    %58 = arith.negf %57 : vector<2x32xf32>
    %59 = math.exp %58 : vector<2x32xf32>
    %cst_21 = arith.constant 1.000000e+00 : f32
    %60 = vector.broadcast %cst_21 : f32 to vector<2x32xf32>
    %61 = arith.addf %60, %59 : vector<2x32xf32>
    %62 = arith.divf %60, %61 : vector<2x32xf32>
    %63 = vector.extract_strided_slice %48 {offsets = [0, 64], sizes = [2, 32], strides = [1, 1]} : vector<2x96xf32> to vector<2x32xf32>
    %64 = arith.mulf %55, %16 : vector<2x32xf32>
    %65 = arith.addf %63, %64 : vector<2x32xf32>
    %66 = math.tanh %65 : vector<2x32xf32>
    %cst_22 = arith.constant 1.000000e+00 : f32
    %67 = vector.broadcast %cst_22 : f32 to vector<2x32xf32>
    %68 = arith.subf %67, %62 : vector<2x32xf32>
    %69 = arith.mulf %68, %66 : vector<2x32xf32>
    %70 = arith.mulf %62, %1 : vector<2x32xf32>
    %71 = arith.addf %69, %70 : vector<2x32xf32>
    %c0_23 = arith.constant 0 : index
    %c384 = arith.constant 384 : index
    %72 = vector.load %arg2[%c0_23, %c384] : memref<48x512xf32, #tpu.memory_space<vmem>>, vector<32x20xf32>
    %cst_24 = arith.constant dense<0.000000e+00> : vector<2x20xf32>
    %73 = tpu.matmul %71, %72, %cst_24 {dimension_numbers = #tpu.dot_dimension_numbers<[1], [0], [0], [1], [0, 0, 1, 1], [], []>} : vector<2x32xf32>, vector<32x20xf32>, vector<2x20xf32> -> vector<2x20xf32>
    %74 = vector.broadcast %6 : vector<1x20xf32> to vector<2x20xf32>
    %75 = arith.addf %73, %74 : vector<2x20xf32>
    %cst_25 = arith.constant dense<0xFF800000> : vector<2xf32>
    %76 = vector.multi_reduction <maximumf>, %75, %cst_25 [1] : vector<2x20xf32> to vector<2xf32>
    %77 = vector.shape_cast %76 : vector<2xf32> to vector<2x1xf32>
    %78 = vector.broadcast %77 : vector<2x1xf32> to vector<2x20xf32>
    %79 = arith.subf %75, %78 : vector<2x20xf32>
    %80 = math.exp %79 : vector<2x20xf32>
    %cst_26 = arith.constant dense<0.000000e+00> : vector<2xf32>
    %81 = vector.multi_reduction <add>, %80, %cst_26 [1] : vector<2x20xf32> to vector<2xf32>
    %82 = vector.shape_cast %81 : vector<2xf32> to vector<2x1xf32>
    %83 = math.log %82 : vector<2x1xf32>
    %84 = vector.broadcast %83 : vector<2x1xf32> to vector<2x20xf32>
    %85 = arith.subf %79, %84 : vector<2x20xf32>
    %cst_27 = arith.constant 0.000000e+00 : f32
    %86 = vector.broadcast %cst_27 : f32 to vector<2x12xf32>
    %cst_28 = arith.constant 0.000000e+00 : f32
    %87 = vector.broadcast %cst_28 : f32 to vector<2x24xf32>
    %cst_29 = arith.constant 0.000000e+00 : f32
    %88 = vector.broadcast %cst_29 : f32 to vector<2x32xf32>
    %89 = tpu.concatenate %85, %86, %71, %39, %87, %88 in 1 : vector<2x20xf32>, vector<2x12xf32>, vector<2x32xf32>, vector<2x8xf32>, vector<2x24xf32>, vector<2x32xf32> -> vector<2x128xf32>
    %c0_30 = arith.constant 0 : index
    %c0_31 = arith.constant 0 : index
    %90 = vector.load %arg4[%c0_30, %c0_31] : memref<2x128xf32, #tpu.memory_space<vmem>>, vector<2x128xf32>
    tpu.vector_store %arg4[%c0_30, %c0_31], %89 {strides = array<i32>} : memref<2x128xf32, #tpu.memory_space<vmem>>, vector<2x128xf32>,
    return
  }
}

</mosaic_0001>

<bundles_post_ra>
// kernel: tpu_custom_call.1
= control target key start
LH: loop header
LB: loop body
LE: loop exit
PB: predicated region body
PF: predicated region fallthrough
CT: control target
= control target key end

     0   :  { %9 = vsyncpa [#allocation3], 0  ;;  %s988_s0 = inlined_call_operand.hbm [shape: f32[2,48], index: 0, kind: input, shape index: {}]   ;;  %s989_s1 = inlined_call_operand.hbm [shape: f32[2,8,16], index: 1, kind: input, shape index: {}]   ;;  %s990_s2 = inlined_call_operand.hbm [shape: f32[48,512], index: 2, kind: input, shape index: {}]   ;;  %s991_s3 = inlined_call_operand.hbm [shape: f32[8,128], index: 3, kind: input, shape index: {}]   ;;  %s992_s4 = inlined_call_operand.hbm [shape: f32[2,128], index: 4, kind: output, shape index: {}]  }
   0x1   :  { %10 = vsyncpa [#allocation6], 0 }
   0x2   :  { %11 = vsyncpa [#allocation9], 0 }
   0x3   :  { %12 = vsyncpa [#allocation4], 0  ;;  %s856_s15 = smov [#allocation5]  }
   0x4   :  { %s28_s16 = sshll.u32 %s856_s15, 4  ;;  %s29_s16 = int_to_ptr.vmem [resolvable:$true] %s28_s16 }
   0x5   :  { %s756_s17 = scalar_lea.vmem %s29_s16, 256  ;;  %p761_p1 = scmp.lt.s32.totalorder %s29_s16, %s29_s16 }
   0x6   :  { %p757_p0 = scmp.ne.s32.totalorder %s29_s16, %s756_s17  ;;  %p762_p2 = scmp.lt.s32.totalorder %s756_s17, %s756_s17 }
   0x8   :  { %p763_p3 = por %p762_p2, %p761_p1 }
   0xa   :  { %p764_p4 = pnand %p763_p3, %p757_p0 }
   0xc   :  { %767 = shalt.err (!%p764_p4)
}
   0xd   :  { %s857_s18 = smov 128   ;;  %s858_s19 = smov 8  }
   0xe   :  { %34 = dma.hbm_to_vmem [thread:$0]  %s989_s1, 256, %s29_s16, [#allocation6], %s857_s18, %s857_s18, %s858_s19  }
   0xf   :  { %s859_s22 = smov [#allocation2]   ;;  %s860_s24 = smov [#allocation7]  }
  0x10   :  { %s19_s23 = sshll.u32 %s859_s22, 4  ;;  %s40_s25 = sshll.u32 %s860_s24, 4  ;;  %s20_s23 = int_to_ptr.vmem [resolvable:$true] %s19_s23  ;;  %s41_s25 = int_to_ptr.vmem [resolvable:$true] %s40_s25 }
  0x11   :  { %s776_s26 = scalar_lea.vmem %s20_s23, 32  ;;  %p781_p6 = scmp.lt.s32.totalorder %s20_s23, %s20_s23 }
  0x12   :  { %p777_p5 = scmp.ne.s32.totalorder %s20_s23, %s776_s26  ;;  %p782_p7 = scmp.lt.s32.totalorder %s776_s26, %s776_s26 }
  0x14   :  { %p783_p8 = por %p782_p7, %p781_p6 }
  0x16   :  { %p784_p9 = pnand %p783_p8, %p777_p5 }
  0x18   :  { %787 = shalt.err (!%p784_p9)
}
  0x19   :  { %22 = dma.hbm_to_vmem [thread:$0]  %s988_s0, 32, %s20_s23, [#allocation3]  }
  0x1a   :  { %s796_s29 = scalar_lea.vmem %s41_s25, 3072  ;;  %p801_p11 = scmp.lt.s32.totalorder %s41_s25, %s41_s25 }
  0x1b   :  { %p797_p10 = scmp.ne.s32.totalorder %s41_s25, %s796_s29  ;;  %p802_p12 = scmp.lt.s32.totalorder %s796_s29, %s796_s29 }
  0x1d   :  { %p803_p13 = por %p802_p12, %p801_p11 }
  0x1f   :  { %p804_p0 = pnand %p803_p13, %p797_p10 }
  0x21   :  { %807 = shalt.err (!%p804_p0)
}
  0x22   :  { %s861_s1 = smov 512   ;;  %s862_s30 = smov 32  }
  0x23   :  { %46 = dma.hbm_to_vmem [thread:$0]  %s990_s2, 3072, %s41_s25, [#allocation6], %s861_s1, %s861_s1, %s862_s30  }
  0x24   :  { %s863_s7 = smov [#allocation8]  }
  0x25   :  { %s53_s8 = sshll.u32 %s863_s7, 4  ;;  %s54_s8 = int_to_ptr.vmem [resolvable:$true] %s53_s8 }
  0x26   :  { %s816_s9 = scalar_lea.vmem %s54_s8, 128  ;;  %p821_p2 = scmp.lt.s32.totalorder %s54_s8, %s54_s8 }
  0x27   :  { %p817_p1 = scmp.ne.s32.totalorder %s54_s8, %s816_s9  ;;  %p822_p3 = scmp.lt.s32.totalorder %s816_s9, %s816_s9 }
  0x29   :  { %p823_p4 = por %p822_p3, %p821_p2 }
  0x2b   :  { %p824_p5 = pnand %p823_p4, %p817_p1 }
  0x2d   :  { %827 = shalt.err (!%p824_p5)
}
  0x2e   :  { %56 = dma.hbm_to_vmem [thread:$0]  %s991_s3, 128, %s54_s8, [#allocation9]  }
  0x2f   :  { %848 = dma.done.wait [#allocation3], 32  }
  0x30   :  { %849 = vsyncadd [#allocation3], 4294967264 }
  0x31   :  { %850 = dma.done.wait [#allocation6], 3328  }
  0x32   :  { %851 = vsyncadd [#allocation6], 4294963968 }
  0x33   :  { %852 = dma.done.wait [#allocation9], 128  }
  0x34   :  { %853 = vsyncadd [#allocation9], 4294967168  ;;  %v864_v0 = vmov 0.0   ;;  %v88_v1 = vld [vmem:[#allocation7 + $0xa8] sm:$0xff]  ;;  %v87_v2 = vld [vmem:[#allocation7 + $0xa0] sm:$0xff]  ;;  %vm175_vm0 = vcmask 130048   ;;  %v261_v20 = vlaneseq }
  0x35   :  { %157 = vmatprep.mubr.f32.mxu0 %v864_v0  ;;  %v86_v3 = vld [vmem:[#allocation7 + $0x88] sm:$0xff]  ;;  %113 = vmatprep.subr.mxu0 %v88_v1  ;;  %v85_v4 = vld [vmem:[#allocation7 + $0x80] sm:$0xff]  ;;  %v910_v7 = vld [vmem:[#allocation7 + $0x30] sm:$0xff]  ;;  %vm89_vm1 = vcmask 392192   ;;  %v865_v18 = vmov 1966171168  }
  0x36   :  { %114 = vmatpush1.msra.mxu0 %v87_v2  ;;  %v84_v5 = vld [vmem:[#allocation7 + $0x68] sm:$0xff]  ;;  %v83_v6 = vld [vmem:[#allocation7 + $0x60] sm:$0xff]  ;;  %684 = vmatprep.subr.mxu1 %v910_v7  ;;  %v913_v9 = vld [vmem:[#allocation7 + $0x10] sm:$0xff]  ;;  %v259_v19 = vunpack.c.l.s4 %v865_v18  ;;  %v930_v22 = vshrl.u32 %v261_v20, 7  ;;  %vm300_vm2 = vcmask 261120   ;;  %v310_v48 = vand.u32 127, %v261_v20 }
  0x37   :  { %115 = vmatprep.subr.mxu0 %v86_v3  ;;  %v82_v8 = vld [vmem:[#allocation7 + $0x48] sm:$0xff]  ;;  %v81_v10 = vld [vmem:[#allocation7 + $0x40] sm:$0xff]  ;;  %685 = vmatpush3.msra.mxu1 %v910_v7  ;;  %v916_v11 = vld [vmem:[#allocation5] sm:$0xff]  ;;  %vm319_vm3 = vcmask 1041409   ;;  %vm322_vm4 = vcmask 58368   ;;  %v866_v56 = vmov 0  }
  0x38   :  { %116 = vmatpush1.msra.mxu0 %v85_v4  ;;  %v80_v12 = vld [vmem:[#allocation7 + $0x28] sm:$0xff]  ;;  %686 = vmatprep.subr.mxu1 %v913_v9  ;;  %v919_v13 = vld [vmem:[#allocation5 + $0x8] sm:$0xff]  ;;  %v79_v14 = vld [vmem:[#allocation7 + $0x20] sm:$0xff]  ;;  %v260_v21 = vunpack.c.0.s8 %v259_v19  ;;  %v937_v29 = vsub.s32 0, %v930_v22  ;;  %v313_v50 = vsub.s32 %v310_v48, %v930_v22  ;;  %v333_v57 = vsub.s32 1, %v930_v22  ;;  %s867_s2 = smov 96  }
  0x39   :  { %117 = vmatprep.subr.mxu0 %v84_v5  ;;  %687 = vmatpush3.msra.mxu1 %v913_v9  ;;  %v78_v15 = vld [vmem:[#allocation7 + $0x8] sm:$0xff]  ;;  %v77_v16 = vld [vmem:[#allocation7] sm:$0xff]  ;;  %vm868_vm5 = vmmov 0   ;;  %s869_s3 = smov 64   ;;  %vm610_vm6 = vcmask 156672   ;;  %vm634_vm7 = vcmask 162816  }
  0x3a   :  { %118 = vmatpush1.msra.mxu0 %v83_v6  ;;  %688 = vmatprep.mubr.msk.f32.mxu1 %vm175_vm0, %v916_v11  ;;  %v926_v17 = vld [vmem:[#allocation2] sm:$0x3]  ;;  %v662_v23 = vld [vmem:[#allocation8] ss:$0 sm:$0xff]  ;;  %v263_v24 = vsub.s32 %v260_v21, %v930_v22  ;;  %v663_v30 = vld [vmem:[#allocation8 + $0x2] ss:$0 sm:$0xff] }
  0x3b   :  { %119 = vmatprep.subr.mxu0 %v82_v8  ;;  %689 = vmatmul.mubr.msk.f32.vlgmr.msra.gmra.mxu1 %vm175_vm0, %v919_v13  ;;  %v666_v41 = vld [vmem:[#allocation8 + $0x4] ss:$0 sm:$0xff]  ;;  %vm637_vm8 = vcmask 523264   ;;  %vm639_vm9 = vcmask 588800   ;;  %s870_s11 = smov [#allocation10]   ;;  %vm641_vm10 = vcmask 785408  }
  0x3c   :  { %120 = vmatpush1.msra.mxu0 %v81_v10  ;;  %691 = vmatprep.subr.mxu1 %v864_v0  ;;  %s650_s12 = sshll.u32 %s870_s11, 4  ;;  %s651_s12 = int_to_ptr.vmem [resolvable:$true] %s650_s12 }
  0x3d   :  { %121 = vmatprep.subr.mxu0 %v80_v12  ;;  %725 = vset.pattern.permute.xlu0 %v866_v56  ;;  %s828_s13 = scalar_lea.vmem %s651_s12, 32  ;;  %p833_p7 = scmp.lt.s32.totalorder %s651_s12, %s651_s12 }
  0x3e   :  { %122 = vmatpush1.msra.mxu0 %v79_v14  ;;  %724 = vset.pattern.permute.xlu1 %v866_v56  ;;  %p829_p6 = scmp.ne.s32.totalorder %s651_s12, %s828_s13  ;;  %p834_p8 = scmp.lt.s32.totalorder %s828_s13, %s828_s13 }
  0x3f   :  { %123 = vmatprep.subr.mxu0 %v78_v15  ;;  %695 = vmatprep.mubr.msk.f32.mxu1 %vm868_vm5, %v864_v0 }
  0x40   :  { %124 = vmatpush1.msra.mxu0 %v77_v16  ;;  %p835_p9 = por %p834_p8, %p833_p7 }
  0x41   :  { %661 = vmatmul.mubr.msk.f32.vlgmr.msra.gmra.mxu0 %vm89_vm1, %v926_v17 }
  0x42   :  { %p836_p10 = pnand %p835_p9, %p829_p6 }
  0xfb   :  { %v690_v26 = vpop.f32.mrf.mxu1 }
  0xfc   :  { %v254_v37 = vadd.f32 %v690_v26, %v663_v30 }
  0xfd   :  { %v248_v31 = vpop.f32.mrf.mxu1 }
  0xfe   :  { %v249_v35 = vadd.f32 %v663_v30, %v248_v31 }
 0x101   :  { %v159_v25 = vpop.f32.mrf.mxu0 }
 0x102   :  { %v933_v27 = vadd.f32 %v662_v23, %v159_v25 }
 0x104   :  { %v264_v28 = vrot.slane %v933_v27, %v263_v24 }
 0x106   :  { %v265_v32 = vcombine.high %v264_v28, %v264_v28  ;;  %v272_v33 = vrot.slane %v264_v28, %v263_v24 }
 0x108   :  { %v279_v34 = vrot.slane %v265_v32, %v263_v24  ;;  %v283_v36 = vrot.slane %v272_v33, %v937_v29 }
 0x10a   :  { %v287_v38 = vrot.slane %v279_v34, %v937_v29  ;;  %v290_v39 = vadd.f32 %v283_v36, %v249_v35 }
 0x10c   :  { %v291_v40 = vadd.f32 %v287_v38, %v254_v37  ;;  %726 = vtanh.f32 %v290_v39 }
 0x10e   :  { %728 = vtanh.f32 %v291_v40 }
 0x119   :  { %v727_v42 = vpop.eup %726 }
 0x11a   :  { %v298_v43 = vmul.f32 %v727_v42, %v666_v41 }
 0x11b   :  { %v729_v44 = vpop.eup %728 }
 0x11c   :  { %v301_v45 = vsel %vm300_vm2, %v298_v43, 0.0  ;;  %v299_v46 = vmul.f32 %v729_v44, %v666_v41  ;;  %v161_v44 = vpop.f32.mrf.mxu0 }
 0x11d   :  { %302 = vadd.xlane.f32.xlu0 %v301_v45  ;;  %v668_v45 = vld [vmem:[#allocation8 + $0x1] ss:$0 sm:$0xff] }
 0x11e   :  { %v304_v47 = vsel %vm300_vm2, %v299_v46, 0.0 }
 0x121   :  { %305 = vadd.xlane.f32.xlu0 %v304_v47 }
 0x1a6   :  { %v303_v49 = vpop.xlane.xlu0 %302 }
 0x1a7   :  { %v314_v52 = vrot.slane %v303_v49, %v313_v50 }
 0x1aa   :  { %v306_v51 = vpop.xlane.xlu0 %305 }
 0x1ab   :  { %v318_v53 = vrot.slane %v306_v51, %v313_v50 }
 0x1ad   :  { %v320_v54 = vsel %vm319_vm3, %v318_v53, %v314_v52 }
 0x1ae   :  { %v323_v55 = vsel %vm322_vm4, %v320_v54, -inf }
 0x1af   :  { %324 = vmax.xlane.f32.xlu1 %v323_v55 }
 0x238   :  { %v325_v58 = vpop.xlane.xlu1 %324 }
 0x239   :  { %v330_v59 = vrot.slane %v325_v58, %v937_v29  ;;  %v334_v60 = vrot.slane %v325_v58, %v333_v57 }
 0x23b   :  { %v337_v61 = vsub.f32 %v303_v49, %v330_v59  ;;  %v338_v62 = vsub.f32 %v306_v51, %v334_v60  ;;  %v530_v60 = vld [vmem:[#allocation7 + $0x78] sm:$0xff] }
 0x23d   :  { %v339_v63 = vmul.f32 1.442695, %v337_v61  ;;  %v341_v1 = vmul.f32 1.442695, %v338_v62  ;;  %v529_v61 = vld [vmem:[#allocation7 + $0x58] sm:$0xff] }
 0x23e   :  { %v528_v62 = vld [vmem:[#allocation7 + $0x38] sm:$0xff] }
 0x23f   :  { %730 = vpow2.f32 %v339_v63  ;;  %v527_v63 = vld [vmem:[#allocation7 + $0x18] sm:$0xff] }
 0x240   :  { %732 = vpow2.f32 %v341_v1 }
 0x24c   :  { %v731_v2 = vpop.eup %730 }
 0x24d   :  { %v733_v3 = vpop.eup %732  ;;  %346 = vperm.xlu1 %724, %v731_v2  }
 0x24e   :  { %349 = vperm.xlu0 %725, %v733_v3  }
 0x2c8   :  { %v347_v4 = vpop.permute.xlu1 %346 }
 0x2c9   :  { %v350_v5 = vpop.permute.xlu0 %349  ;;  %v354_v6 = vrot.slane %v347_v4, %v313_v50 }
 0x2ca   :  { %v358_v8 = vrot.slane %v350_v5, %v313_v50 }
 0x2cc   :  { %v359_v10 = vsel %vm319_vm3, %v358_v8, %v354_v6 }
 0x2cd   :  { %v361_v12 = vsel %vm322_vm4, %v359_v10, 0.0  ;;  %v670_v10 = vld [vmem:[#allocation8 + $0x3] ss:$0 sm:$0xff] }
 0x2ce   :  { %362 = vadd.xlane.f32.xlu1 %v361_v12 }
 0x2df   :  { %414 = vrot.lane.b32.xlu1 %v910_v7, %s867_s2  ;;  %v623_v7 = vadd.s32 4294967232, %v310_v48 }
 0x2e1   :  { %v626_v25 = vsub.s32 %v623_v7, %v930_v22 }
 0x357   :  { %v363_v14 = vpop.xlane.xlu1 %362 }
 0x358   :  { %v368_v15 = vrot.slane %v363_v14, %v937_v29  ;;  %v372_v16 = vrot.slane %v363_v14, %v333_v57 }
 0x35a   :  { %734 = vrcp.f32 %v368_v15 }
 0x35b   :  { %736 = vrcp.f32 %v372_v16  ;;  %v415_v23 = vpop.permute.xlu1 %414 }
 0x35c   :  { %692 = vmatpush3.msra.mxu1 %v415_v23 }
 0x35d   :  { %693 = vmatprep.subr.mxu1 %v864_v0 }
 0x367   :  { %v735_v18 = vpop.eup %734 }
 0x368   :  { %v376_v19 = vmul.f32 %v735_v18, %v731_v2  ;;  %v737_v20 = vpop.eup %736 }
 0x369   :  { %v378_v21 = vmul.f32 %v737_v20, %v733_v3 }
 0x36a   :  { %381 = vperm.xlu0 %725, %v376_v19  }
 0x36e   :  { %386 = vperm.xlu0 %725, %v378_v21  }
 0x372   :  { %412 = vrot.lane.b32.xlu0 %v913_v9, %s867_s2 }
 0x376   :  { %496 = vrot.lane.b32.xlu0 %v933_v27, %s867_s2 }
 0x37a   :  { %506 = vrot.lane.b32.xlu0 %v933_v27, %s862_s30 }
 0x3e5   :  { %v382_v24 = vpop.permute.xlu0 %381 }
 0x3e6   :  { %v389_v9 = vmul.f32 %v382_v24, %v916_v11  ;;  %v627_v30 = vrot.slane %v382_v24, %v626_v25 }
 0x3e8   :  { %v391_v26 = vsel %vm175_vm0, %v389_v9, 0.0 }
 0x3e9   :  { %v392_v28 = vrot.slane %v391_v26, 4  ;;  %v387_v29 = vpop.permute.xlu0 %386 }
 0x3ea   :  { %v390_v31 = vmul.f32 %v387_v29, %v919_v13  ;;  %v631_v32 = vrot.slane %v387_v29, %v626_v25 }
 0x3eb   :  { %v393_v33 = vadd.f32 %v392_v28, %v391_v26 }
 0x3ec   :  { %v398_v34 = vsel %vm175_vm0, %v390_v31, 0.0  ;;  %v968_v35 = vsel %vm319_vm3, %v631_v32, %v627_v30 }
 0x3ed   :  { %v394_v27 = vrot.slane %v393_v33, 2  ;;  %v399_v36 = vrot.slane %v398_v34, 4  ;;  %v413_v37 = vpop.permute.xlu0 %412 }
 0x3ee   :  { %694 = vmatpush3.msra.mxu1 %v413_v37 }
 0x3ef   :  { %v395_v22 = vadd.f32 %v394_v27, %v393_v33  ;;  %v400_v11 = vadd.f32 %v399_v36, %v398_v34  ;;  %698 = vmatprep.subr.mxu1 %v864_v0 }
 0x3f1   :  { %v401_v38 = vrot.slane %v400_v11, 2  ;;  %v396_v39 = vrot.slane %v395_v22, 1  ;;  %v497_v50 = vpop.permute.xlu0 %496 }
 0x3f3   :  { %v402_v40 = vadd.f32 %v401_v38, %v400_v11  ;;  %v397_v13 = vadd.f32 %v396_v39, %v395_v22 }
 0x3f5   :  { %v403_v41 = vrot.slane %v402_v40, 1  ;;  %v507_v56 = vpop.permute.xlu0 %506 }
 0x3f7   :  { %v404_v42 = vadd.f32 %v403_v41, %v402_v40 }
 0x3f9   :  { %v409_v43 = vsel %vm319_vm3, %v404_v42, %v397_v13 }
 0x3fa   :  { %696 = vmatmul.mubr.msk.f32.vlgmr.msra.gmra.mxu1 %vm175_vm0, %v409_v43 }
 0x3fb   :  { %706 = vmatprep.mubr.msk.f32.mxu1 %vm868_vm5, %v864_v0  ;;  %699 = vmatpush3.msra.mxu1 %v530_v60 }
 0x3fc   :  { %700 = vmatprep.subr.mxu1 %v864_v0 }
 0x3fd   :  { %701 = vmatpush3.msra.mxu1 %v529_v61 }
 0x3fe   :  { %702 = vmatprep.subr.mxu1 %v864_v0 }
 0x3ff   :  { %703 = vmatpush3.msra.mxu1 %v528_v62 }
 0x400   :  { %704 = vmatprep.subr.mxu1 %v864_v0 }
 0x401   :  { %705 = vmatpush3.msra.mxu1 %v527_v63 }
 0x4ba   :  { %v486_v46 = vpop.f32.mrf.mxu1 }
 0x4bb   :  { %v490_v47 = vadd.f32 %v486_v46, %v161_v44 }
 0x4bc   :  { %v697_v48 = vpop.f32.mrf.mxu1 }
 0x4bd   :  { %v495_v49 = vadd.f32 %v668_v45, %v490_v47 }
 0x4bf   :  { %v499_v51 = vadd.f32 %v497_v50, %v495_v49 }
 0x4c1   :  { %v669_v52 = vmul.f32 -1.442695, %v499_v51 }
 0x4c3   :  { %738 = vpow2.f32 %v669_v52 }
 0x4d0   :  { %v739_v53 = vpop.eup %738 }
 0x4d1   :  { %v503_v54 = vadd.f32 1.0, %v739_v53 }
 0x4d3   :  { %740 = vrcp.f32 %v503_v54 }
 0x4e0   :  { %v741_v55 = vpop.eup %740 }
 0x4e1   :  { %v509_v57 = vmul.f32 %v741_v55, %v507_v56  ;;  %v516_v2 = vsub.f32 1.0, %v741_v55 }
 0x4e3   :  { %511 = vrot.lane.b32.xlu0 %v509_v57, %s869_s3 }
 0x4e7   :  { %522 = vrot.lane.b32.xlu0 %v926_v17, %s862_s30 }
 0x555   :  { %v512_v58 = vpop.permute.xlu0 %511 }
 0x556   :  { %v514_v59 = vadd.f32 %v512_v58, %v495_v49 }
 0x558   :  { %742 = vtanh.f32 %v514_v59 }
 0x559   :  { %v523_v17 = vpop.permute.xlu0 %522 }
 0x55a   :  { %v525_v4 = vmul.f32 %v741_v55, %v523_v17 }
 0x565   :  { %v743_v1 = vpop.eup %742 }
 0x566   :  { %518 = vrot.lane.b32.xlu1 %v743_v1, %s867_s2 }
 0x5d8   :  { %v519_v3 = vpop.permute.xlu1 %518 }
 0x5d9   :  { %v521_v5 = vmul.f32 %v519_v3, %v516_v2 }
 0x5db   :  { %v526_v6 = vadd.f32 %v525_v4, %v521_v5 }
 0x5dd   :  { %536 = vrot.lane.b32.xlu1 %v526_v6, %s867_s2 }
 0x64f   :  { %v537_v8 = vpop.permute.xlu1 %536 }
 0x650   :  { %707 = vmatmul.mubr.msk.f32.vlgmr.msra.gmra.mxu1 %vm300_vm2, %v537_v8 }
 0x710   :  { %v606_v12 = vpop.f32.mrf.mxu1 }
 0x711   :  { %v607_v14 = vadd.f32 %v670_v10, %v606_v12 }
 0x712   :  { %v708_v0 = vpop.f32.mrf.mxu1 }
 0x713   :  { %v611_v15 = vsel %vm610_vm6, %v607_v14, -inf }
 0x714   :  { %612 = vmax.xlane.f32.xlu0 %v611_v15 }
 0x79d   :  { %v613_v16 = vpop.xlane.xlu0 %612 }
 0x79e   :  { %v614_v18 = vsub.f32 %v607_v14, %v613_v16 }
 0x7a0   :  { %v615_v19 = vmul.f32 1.442695, %v614_v18 }
 0x7a2   :  { %744 = vpow2.f32 %v615_v19 }
 0x7af   :  { %v745_v20 = vpop.eup %744 }
 0x7b0   :  { %v617_v21 = vsel %vm610_vm6, %v745_v20, 0.0 }
 0x7b1   :  { %618 = vadd.xlane.f32.xlu1 %v617_v21 }
 0x83a   :  { %v619_v23 = vpop.xlane.xlu1 %618 }
 0x83b   :  { %746 = vlog2.f32 %v619_v23 }
 0x848   :  { %v747_v7 = vpop.eup %746 }
 0x849   :  { %v621_v24 = vmul.f32 0.6931472, %v747_v7 }
 0x84b   :  { %v622_v25 = vsub.f32 %v614_v18, %v621_v24 }
 0x84d   :  { %v635_v9 = vsel %vm634_vm7, %v622_v25, 0.0 }
 0x84e   :  { %v636_v26 = vsel %vm300_vm2, %v635_v9, %v526_v6 }
 0x84f   :  { %v638_v28 = vsel %vm637_vm8, %v636_v26, %v968_v35 }
 0x850   :  { %v640_v29 = vsel %vm639_vm9, %v638_v28, 0.0 }
 0x851   :  { %v642_v30 = vsel %vm641_vm10, %v640_v29, 0.0 }
 0x852   :  { %643 = vst [vmem:[#allocation10] sm:$0x3] %v642_v30 }
 0x853   :  { %839 = shalt.err (!%p836_p10)
}
 0x854   :  { %653 = dma.vmem_to_hbm [thread:$0]  %s651_s12, 32, %s992_s4, [#allocation4]  }
 0x855   :  { %854 = dma.done.wait [#allocation4], 32  }
 0x856   :  { %855 = vsyncadd [#allocation4], 4294967264 }
 0x857   :  { %657 = vsyncpa [#allocation3], 1 }
 0x858   :  { %658 = vsyncpa [#allocation6], 1 }
 0x859   :  { %659 = vsyncpa [#allocation9], 1 }
 0x85a   :  { %660 = vsyncpa [#allocation4], 1 }

</bundles_post_ra>
